<compile_context>
chip_gen: v7x
topology: tpu7x:2x2x1
jax: 0.10.0
libtpu: 0.0.40
codegen_flags: <defaults>
</compile_context>

<pallas_src>
import math
import jax
import jax.numpy as jnp
from jax.experimental import pallas as pl
from jax.experimental.pallas import tpu as pltpu

# ----------------------- model config (small, consistent with module) -----------------------
B = 2          # batch
S = 8          # sequence length
E = 32         # embed_size
H = 4          # num_heads
HD = E // H    # head_dim
FE = 4         # forward_expansion
FF = FE * E    # feed-forward hidden size
EPS = 1e-5     # nn.LayerNorm default eps


def _layer_norm(x, gamma, beta):
    # x: (S, E); gamma/beta: (1, E) -- biased variance like torch.nn.LayerNorm
    mu = jnp.mean(x, axis=-1, keepdims=True)
    xc = x - mu
    var = jnp.mean(xc * xc, axis=-1, keepdims=True)
    inv = jax.lax.rsqrt(var + EPS)
    return xc * inv * gamma + beta


def encoder_layer_kernel(x_ref, amask_ref,
                         wq_ref, bq_ref, wk_ref, bk_ref, wv_ref, bv_ref,
                         wo_ref, bo_ref,
                         g1_ref, be1_ref,
                         w1_ref, b1_ref, w2_ref, b2_ref,
                         g2_ref, be2_ref,
                         out_ref):
    # One grid step == one batch element (grid axis is "parallel" for v7x megacore).
    x = x_ref[...]                        # (S, E)
    amask = amask_ref[...]                # (S, S) additive mask (0 allowed, -1e9 masked)

    # ---- Q/K/V directly in head-major layout: leading-batch matmuls, no transposes ----
    xh = jnp.broadcast_to(x, (H, S, E))   # hoisted once, reused for Q, K, V
    qh = jnp.einsum('hse,hed->hsd', xh, wq_ref[...],
                    preferred_element_type=jnp.float32) + bq_ref[...]   # (H, S, HD)
    kh = jnp.einsum('hse,hed->hsd', xh, wk_ref[...],
                    preferred_element_type=jnp.float32) + bk_ref[...]   # (H, S, HD)
    vh = jnp.einsum('hse,hed->hsd', xh, wv_ref[...],
                    preferred_element_type=jnp.float32) + bv_ref[...]   # (H, S, HD)

    # ---- scores: batch over heads, contract head_dim ----
    scale = 1.0 / math.sqrt(HD)
    s = jnp.einsum('hqd,hkd->hqk', qh, kh,
                   preferred_element_type=jnp.float32) * scale          # (H, S, S)
    s = s + amask[None, :, :]

    # ---- softmax over keys on a single 2-D (H*S, S) slab (one layout, one XLU pass) ----
    s2 = s.reshape(H * S, S)
    s2 = s2 - jnp.max(s2, axis=-1, keepdims=True)
    p2 = jnp.exp(s2)
    p2 = p2 / jnp.sum(p2, axis=-1, keepdims=True)   # exact divide: strict parity w/ reference
    p = p2.reshape(H, S, S)

    # ---- attention * V: batch over heads, contract keys ----
    o = jnp.einsum('hqk,hkd->hqd', p, vh,
                   preferred_element_type=jnp.float32)                  # (H, S, HD)

    # ---- output projection with head-merge folded in (no transpose / concat) ----
    # wo_ref is (H, HD, E); sum over heads of per-head projections == concat(heads) @ Wo.
    attn = jnp.einsum('hqd,hde->hqe', o, wo_ref[...],
                      preferred_element_type=jnp.float32)               # (H, S, E)
    attn = jnp.sum(attn, axis=0) + bo_ref[...]                          # (S, E)

    # ---- residual + LayerNorm1 ----
    # TODO(synk): nn.Dropout omitted (eval-mode identity).
    y = _layer_norm(x + attn, g1_ref[...], be1_ref[...])

    # ---- feed-forward: Linear -> ReLU -> Linear ----
    h1 = jnp.dot(y, w1_ref[...], preferred_element_type=jnp.float32) + b1_ref[...]
    h1 = jnp.maximum(h1, 0.0)
    ff = jnp.dot(h1, w2_ref[...], preferred_element_type=jnp.float32) + b2_ref[...]

    # ---- residual + LayerNorm2 ----
    out_ref[...] = _layer_norm(y + ff, g2_ref[...], be2_ref[...])


# ----------------------- one-time prep (hoisted out of the forward path) -----------------------
def prepare_params(params):
    """Re-arrange PyTorch-layout params into the kernel's head-major layouts (one-time)."""
    (wq, bq, wk, bk, wv, bv, wo, bo, g1, be1, w1, b1, w2, b2, g2, be2) = params

    def head_w(w):   # (E, E) -> (H, E, HD) : w_h[h, e, d] = w[e, h*HD + d]
        return jnp.transpose(w.reshape(E, H, HD), (1, 0, 2))

    def head_b(b):   # (1, E) -> (H, 1, HD)
        return b.reshape(H, HD)[:, None, :]

    wq_h, wk_h, wv_h = head_w(wq), head_w(wk), head_w(wv)
    bq_h, bk_h, bv_h = head_b(bq), head_b(bk), head_b(bv)
    wo_h = wo.reshape(H, HD, E)   # fold head-merge into output projection

    return (wq_h, bq_h, wk_h, bk_h, wv_h, bv_h, wo_h, bo,
            g1, be1, w1, b1, w2, b2, g2, be2)


def make_additive_mask(mask):
    """0 where mask==1, -1e9 where mask==0 (avoids inf-inf NaNs); computed once."""
    return (mask.astype(jnp.float32) - 1.0) * 1e9


# ----------------------- wrapper -----------------------
@jax.jit
def encoder_layer(x, add_mask, kparams):
    (wq_h, bq_h, wk_h, bk_h, wv_h, bv_h, wo_h, bo,
     g1, be1, w1, b1, w2, b2, g2, be2) = kparams

    x2d = x.reshape(B * S, E)

    def const2(shape):
        return pl.BlockSpec(shape, lambda b: (0, 0))

    def const3(shape):
        return pl.BlockSpec(shape, lambda b: (0, 0, 0))

    out2d = pl.pallas_call(
        encoder_layer_kernel,
        out_shape=jax.ShapeDtypeStruct((B * S, E), jnp.float32),
        grid=(B,),
        in_specs=[
            pl.BlockSpec((S, E), lambda b: (b, 0)),   # x rows for this batch element
            const2((S, S)),                           # additive mask
            const3((H, E, HD)), const3((H, 1, HD)),   # Wq, bq (head-major)
            const3((H, E, HD)), const3((H, 1, HD)),   # Wk, bk
            const3((H, E, HD)), const3((H, 1, HD)),   # Wv, bv
            const3((H, HD, E)), const2((1, E)),       # Wo (head-major), bo
            const2((1, E)), const2((1, E)),           # gamma1, beta1
            const2((E, FF)), const2((1, FF)),         # W1, b1
            const2((FF, E)), const2((1, E)),          # W2, b2
            const2((1, E)), const2((1, E)),           # gamma2, beta2
        ],
        out_specs=pl.BlockSpec((S, E), lambda b: (b, 0)),
        compiler_params=pltpu.CompilerParams(
            dimension_semantics=("parallel",)),       # shard batch across v7x's 2 TCs
    )(x2d, add_mask,
      wq_h, bq_h, wk_h, bk_h, wv_h, bv_h, wo_h, bo,
      g1, be1, w1, b1, w2, b2, g2, be2)

    return out2d.reshape(B, S, E)


# ----------------------- pure-JAX reference for verification -----------------------
def reference(x, mask, params):
    (wq, bq, wk, bk, wv, bv, wo, bo, g1, be1, w1, b1, w2, b2, g2, be2) = params

    def ln(t, g, b):
        mu = jnp.mean(t, axis=-1, keepdims=True)
        var = jnp.mean((t - mu) ** 2, axis=-1, keepdims=True)
        return (t - mu) / jnp.sqrt(var + EPS) * g + b

    q = x @ wq + bq
    k = x @ wk + bk
    v = x @ wv + bv
    q = q.reshape(B, S, H, HD).transpose(0, 2, 1, 3)
    k = k.reshape(B, S, H, HD).transpose(0, 2, 1, 3)
    v = v.reshape(B, S, H, HD).transpose(0, 2, 1, 3)
    s = jnp.einsum("bhqd,bhkd->bhqk", q, k) / math.sqrt(HD)
    s = jnp.where(mask[None, None, :, :] == 0, -jnp.inf, s)
    p = jax.nn.softmax(s, axis=-1)
    o = jnp.einsum("bhqk,bhkd->bhqd", p, v).transpose(0, 2, 1, 3).reshape(B, S, E)
    o = o @ wo + bo
    y = ln(x + o, g1, be1)
    f = jnp.maximum(y @ w1 + b1, 0.0) @ w2 + b2
    return ln(y + f, g2, be2)


if __name__ == "__main__":
    key = jax.random.PRNGKey(0)
    keys = jax.random.split(key, 13)

    # Deterministic parameter init (shapes follow nn.Linear / nn.LayerNorm in __init__).
    def lin(kw, kb, fan_in, fan_out):
        lim = 1.0 / math.sqrt(fan_in)
        w = jax.random.uniform(kw, (fan_in, fan_out), jnp.float32, -lim, lim)
        b = jax.random.uniform(kb, (1, fan_out), jnp.float32, -lim, lim)
        return w, b

    wq, bq = lin(keys[0], keys[1], E, E)
    wk, bk = lin(keys[2], keys[3], E, E)
    wv, bv = lin(keys[4], keys[5], E, E)
    wo, bo = lin(keys[6], keys[7], E, E)
    w1, b1 = lin(keys[8], keys[9], E, FF)
    w2, b2 = lin(keys[10], keys[11], FF, E)
    g1, be1 = jnp.ones((1, E), jnp.float32), jnp.zeros((1, E), jnp.float32)
    g2, be2 = jnp.ones((1, E), jnp.float32), jnp.zeros((1, E), jnp.float32)
    params = (wq, bq, wk, bk, wv, bv, wo, bo, g1, be1, w1, b1, w2, b2, g2, be2)

    x = jax.random.normal(keys[12], (B, S, E), jnp.float32)
    # Causal mask (1 = attend, 0 = masked); at least one allowed key per query row.
    mask = jnp.tril(jnp.ones((S, S), jnp.float32))

    # One-time (hoisted) prep: head-major weight layouts + additive mask.
    kparams = prepare_params(params)
    add_mask = make_additive_mask(mask)

    out = encoder_layer(x, add_mask, kparams)
    out = jax.block_until_ready(out)

    ref = reference(x, mask, params)
    assert out.shape == (B, S, E)
    # Exact softmax divide + f32 matmuls -> tight tolerance.
    assert jnp.allclose(out, ref, atol=1e-4, rtol=1e-4), "mismatch vs reference"
    print("KERNEL_OK")
</pallas_src>

<mosaic_0001>
module attributes {stable_mosaic.version = 11 : i64} {
  func.func @encoder_layer_kernel(%arg0: i32, %arg1: memref<8x32xf32, #tpu.memory_space<vmem>>, %arg2: memref<8x8xf32, #tpu.memory_space<vmem>>, %arg3: memref<4x32x8xf32, #tpu.memory_space<vmem>>, %arg4: memref<4x1x8xf32, #tpu.memory_space<vmem>>, %arg5: memref<4x32x8xf32, #tpu.memory_space<vmem>>, %arg6: memref<4x1x8xf32, #tpu.memory_space<vmem>>, %arg7: memref<4x32x8xf32, #tpu.memory_space<vmem>>, %arg8: memref<4x1x8xf32, #tpu.memory_space<vmem>>, %arg9: memref<4x8x32xf32, #tpu.memory_space<vmem>>, %arg10: memref<1x32xf32, #tpu.memory_space<vmem>>, %arg11: memref<1x32xf32, #tpu.memory_space<vmem>>, %arg12: memref<1x32xf32, #tpu.memory_space<vmem>>, %arg13: memref<32x128xf32, #tpu.memory_space<vmem>>, %arg14: memref<1x128xf32, #tpu.memory_space<vmem>>, %arg15: memref<128x32xf32, #tpu.memory_space<vmem>>, %arg16: memref<1x32xf32, #tpu.memory_space<vmem>>, %arg17: memref<1x32xf32, #tpu.memory_space<vmem>>, %arg18: memref<1x32xf32, #tpu.memory_space<vmem>>, %arg19: memref<8x32xf32, #tpu.memory_space<vmem>>) attributes {dimension_semantics = [#tpu.dimension_semantics<parallel>], iteration_bounds = array<i64: 2>, scalar_prefetch = 0 : i64, scratch_operands = 0 : i64, tpu.core_type = #tpu.core_type<tc>, window_params = [{transform_indices = @transform_0, window_bounds = array<i64: 8, 32>}, {pipeline_mode = #tpu.pipeline_mode<synchronous>, transform_indices = @transform_1, window_bounds = array<i64: 8, 8>}, {pipeline_mode = #tpu.pipeline_mode<synchronous>, transform_indices = @transform_2, window_bounds = array<i64: 4, 32, 8>}, {pipeline_mode = #tpu.pipeline_mode<synchronous>, transform_indices = @transform_3, window_bounds = array<i64: 4, 1, 8>}, {pipeline_mode = #tpu.pipeline_mode<synchronous>, transform_indices = @transform_4, window_bounds = array<i64: 4, 32, 8>}, {pipeline_mode = #tpu.pipeline_mode<synchronous>, transform_indices = @transform_5, window_bounds = array<i64: 4, 1, 8>}, {pipeline_mode = #tpu.pipeline_mode<synchronous>, transform_indices = @transform_6, window_bounds = array<i64: 4, 32, 8>}, {pipeline_mode = #tpu.pipeline_mode<synchronous>, transform_indices = @transform_7, window_bounds = array<i64: 4, 1, 8>}, {pipeline_mode = #tpu.pipeline_mode<synchronous>, transform_indices = @transform_8, window_bounds = array<i64: 4, 8, 32>}, {pipeline_mode = #tpu.pipeline_mode<synchronous>, transform_indices = @transform_9, window_bounds = array<i64: 1, 32>}, {pipeline_mode = #tpu.pipeline_mode<synchronous>, transform_indices = @transform_10, window_bounds = array<i64: 1, 32>}, {pipeline_mode = #tpu.pipeline_mode<synchronous>, transform_indices = @transform_11, window_bounds = array<i64: 1, 32>}, {pipeline_mode = #tpu.pipeline_mode<synchronous>, transform_indices = @transform_12, window_bounds = array<i64: 32, 128>}, {pipeline_mode = #tpu.pipeline_mode<synchronous>, transform_indices = @transform_13, window_bounds = array<i64: 1, 128>}, {pipeline_mode = #tpu.pipeline_mode<synchronous>, transform_indices = @transform_14, window_bounds = array<i64: 128, 32>}, {pipeline_mode = #tpu.pipeline_mode<synchronous>, transform_indices = @transform_15, window_bounds = array<i64: 1, 32>}, {pipeline_mode = #tpu.pipeline_mode<synchronous>, transform_indices = @transform_16, window_bounds = array<i64: 1, 32>}, {pipeline_mode = #tpu.pipeline_mode<synchronous>, transform_indices = @transform_17, window_bounds = array<i64: 1, 32>}, {transform_indices = @transform_18, window_bounds = array<i64: 8, 32>}]} {
    %c0 = arith.constant 0 : index
    %c0_0 = arith.constant 0 : index
    %0 = vector.load %arg1[%c0, %c0_0] : memref<8x32xf32, #tpu.memory_space<vmem>>, vector<8x32xf32>
    %c0_1 = arith.constant 0 : index
    %c0_2 = arith.constant 0 : index
    %1 = vector.load %arg2[%c0_1, %c0_2] : memref<8x8xf32, #tpu.memory_space<vmem>>, vector<8x8xf32>
    %2 = vector.shape_cast %0 : vector<8x32xf32> to vector<1x8x32xf32>
    %3 = vector.broadcast %2 : vector<1x8x32xf32> to vector<4x8x32xf32>
    %c0_3 = arith.constant 0 : index
    %c0_4 = arith.constant 0 : index
    %c0_5 = arith.constant 0 : index
    %4 = vector.load %arg3[%c0_3, %c0_4, %c0_5] : memref<4x32x8xf32, #tpu.memory_space<vmem>>, vector<4x32x8xf32>
    "tpu.trace_start"() <{level = 10 : i32, message = "hse,hed->hsd"}> : () -> ()
    %cst = arith.constant dense<0.000000e+00> : vector<4x8x8xf32>
    %5 = tpu.matmul %3, %4, %cst {dimension_numbers = #tpu.dot_dimension_numbers<[2], [1], [1], [2], [0, 0, 0, 1, 1, 2], [0], [0]>} : vector<4x8x32xf32>, vector<4x32x8xf32>, vector<4x8x8xf32> -> vector<4x8x8xf32>
    "tpu.trace_stop"() : () -> ()
    %c0_6 = arith.constant 0 : index
    %c0_7 = arith.constant 0 : index
    %c0_8 = arith.constant 0 : index
    %6 = vector.load %arg4[%c0_6, %c0_7, %c0_8] : memref<4x1x8xf32, #tpu.memory_space<vmem>>, vector<4x1x8xf32>
    %7 = vector.broadcast %6 : vector<4x1x8xf32> to vector<4x8x8xf32>
    %8 = arith.addf %5, %7 : vector<4x8x8xf32>
    %c0_9 = arith.constant 0 : index
    %c0_10 = arith.constant 0 : index
    %c0_11 = arith.constant 0 : index
    %9 = vector.load %arg5[%c0_9, %c0_10, %c0_11] : memref<4x32x8xf32, #tpu.memory_space<vmem>>, vector<4x32x8xf32>
    "tpu.trace_start"() <{level = 10 : i32, message = "hse,hed->hsd"}> : () -> ()
    %cst_12 = arith.constant dense<0.000000e+00> : vector<4x8x8xf32>
    %10 = tpu.matmul %3, %9, %cst_12 {dimension_numbers = #tpu.dot_dimension_numbers<[2], [1], [1], [2], [0, 0, 0, 1, 1, 2], [0], [0]>} : vector<4x8x32xf32>, vector<4x32x8xf32>, vector<4x8x8xf32> -> vector<4x8x8xf32>
    "tpu.trace_stop"() : () -> ()
    %c0_13 = arith.constant 0 : index
    %c0_14 = arith.constant 0 : index
    %c0_15 = arith.constant 0 : index
    %11 = vector.load %arg6[%c0_13, %c0_14, %c0_15] : memref<4x1x8xf32, #tpu.memory_space<vmem>>, vector<4x1x8xf32>
    %12 = vector.broadcast %11 : vector<4x1x8xf32> to vector<4x8x8xf32>
    %13 = arith.addf %10, %12 : vector<4x8x8xf32>
    %c0_16 = arith.constant 0 : index
    %c0_17 = arith.constant 0 : index
    %c0_18 = arith.constant 0 : index
    %14 = vector.load %arg7[%c0_16, %c0_17, %c0_18] : memref<4x32x8xf32, #tpu.memory_space<vmem>>, vector<4x32x8xf32>
    "tpu.trace_start"() <{level = 10 : i32, message = "hse,hed->hsd"}> : () -> ()
    %cst_19 = arith.constant dense<0.000000e+00> : vector<4x8x8xf32>
    %15 = tpu.matmul %3, %14, %cst_19 {dimension_numbers = #tpu.dot_dimension_numbers<[2], [1], [1], [2], [0, 0, 0, 1, 1, 2], [0], [0]>} : vector<4x8x32xf32>, vector<4x32x8xf32>, vector<4x8x8xf32> -> vector<4x8x8xf32>
    "tpu.trace_stop"() : () -> ()
    %c0_20 = arith.constant 0 : index
    %c0_21 = arith.constant 0 : index
    %c0_22 = arith.constant 0 : index
    %16 = vector.load %arg8[%c0_20, %c0_21, %c0_22] : memref<4x1x8xf32, #tpu.memory_space<vmem>>, vector<4x1x8xf32>
    %17 = vector.broadcast %16 : vector<4x1x8xf32> to vector<4x8x8xf32>
    %18 = arith.addf %15, %17 : vector<4x8x8xf32>
    "tpu.trace_start"() <{level = 10 : i32, message = "hqd,hkd->hqk"}> : () -> ()
    %cst_23 = arith.constant dense<0.000000e+00> : vector<4x8x8xf32>
    %19 = tpu.matmul %8, %13, %cst_23 {dimension_numbers = #tpu.dot_dimension_numbers<[2], [2], [1], [1], [0, 0, 0, 1, 1, 1], [0], [0]>} : vector<4x8x8xf32>, vector<4x8x8xf32>, vector<4x8x8xf32> -> vector<4x8x8xf32>
    "tpu.trace_stop"() : () -> ()
    %cst_24 = arith.constant 0.353553385 : f32
    %20 = vector.broadcast %cst_24 : f32 to vector<4x8x8xf32>
    %21 = arith.mulf %19, %20 : vector<4x8x8xf32>
    %22 = vector.shape_cast %1 : vector<8x8xf32> to vector<1x8x8xf32>
    %23 = vector.broadcast %22 : vector<1x8x8xf32> to vector<4x8x8xf32>
    %24 = arith.addf %21, %23 : vector<4x8x8xf32>
    %25 = vector.shape_cast %24 : vector<4x8x8xf32> to vector<32x8xf32>
    %cst_25 = arith.constant dense<0xFF800000> : vector<32xf32>
    %26 = vector.multi_reduction <maximumf>, %25, %cst_25 [1] : vector<32x8xf32> to vector<32xf32>
    %27 = vector.shape_cast %26 : vector<32xf32> to vector<32x1xf32>
    %28 = vector.broadcast %27 : vector<32x1xf32> to vector<32x8xf32>
    %29 = arith.subf %25, %28 : vector<32x8xf32>
    %30 = math.exp %29 : vector<32x8xf32>
    %cst_26 = arith.constant dense<0.000000e+00> : vector<32xf32>
    %31 = vector.multi_reduction <add>, %30, %cst_26 [1] : vector<32x8xf32> to vector<32xf32>
    %32 = vector.shape_cast %31 : vector<32xf32> to vector<32x1xf32>
    %33 = vector.broadcast %32 : vector<32x1xf32> to vector<32x8xf32>
    %34 = arith.divf %30, %33 : vector<32x8xf32>
    %35 = vector.shape_cast %34 : vector<32x8xf32> to vector<4x8x8xf32>
    "tpu.trace_start"() <{level = 10 : i32, message = "hqk,hkd->hqd"}> : () -> ()
    %cst_27 = arith.constant dense<0.000000e+00> : vector<4x8x8xf32>
    %36 = tpu.matmul %35, %18, %cst_27 {dimension_numbers = #tpu.dot_dimension_numbers<[2], [1], [1], [2], [0, 0, 0, 1, 1, 2], [0], [0]>} : vector<4x8x8xf32>, vector<4x8x8xf32>, vector<4x8x8xf32> -> vector<4x8x8xf32>
    "tpu.trace_stop"() : () -> ()
    %c0_28 = arith.constant 0 : index
    %c0_29 = arith.constant 0 : index
    %c0_30 = arith.constant 0 : index
    %37 = vector.load %arg9[%c0_28, %c0_29, %c0_30] : memref<4x8x32xf32, #tpu.memory_space<vmem>>, vector<4x8x32xf32>
    "tpu.trace_start"() <{level = 10 : i32, message = "hqd,hde->hqe"}> : () -> ()
    %cst_31 = arith.constant dense<0.000000e+00> : vector<4x8x32xf32>
    %38 = tpu.matmul %36, %37, %cst_31 {dimension_numbers = #tpu.dot_dimension_numbers<[2], [1], [1], [2], [0, 0, 0, 1, 1, 2], [0], [0]>} : vector<4x8x8xf32>, vector<4x8x32xf32>, vector<4x8x32xf32> -> vector<4x8x32xf32>
    "tpu.trace_stop"() : () -> ()
    %cst_32 = arith.constant dense<0.000000e+00> : vector<8x32xf32>
    %39 = vector.multi_reduction <add>, %38, %cst_32 [0] : vector<4x8x32xf32> to vector<8x32xf32>
    %c0_33 = arith.constant 0 : index
    %c0_34 = arith.constant 0 : index
    %40 = vector.load %arg10[%c0_33, %c0_34] : memref<1x32xf32, #tpu.memory_space<vmem>>, vector<1x32xf32>
    %41 = vector.broadcast %40 : vector<1x32xf32> to vector<8x32xf32>
    %42 = arith.addf %39, %41 : vector<8x32xf32>
    %43 = arith.addf %0, %42 : vector<8x32xf32>
    %c0_35 = arith.constant 0 : index
    %c0_36 = arith.constant 0 : index
    %44 = vector.load %arg11[%c0_35, %c0_36] : memref<1x32xf32, #tpu.memory_space<vmem>>, vector<1x32xf32>
    %c0_37 = arith.constant 0 : index
    %c0_38 = arith.constant 0 : index
    %45 = vector.load %arg12[%c0_37, %c0_38] : memref<1x32xf32, #tpu.memory_space<vmem>>, vector<1x32xf32>
    %cst_39 = arith.constant dense<0.000000e+00> : vector<8xf32>
    %46 = vector.multi_reduction <add>, %43, %cst_39 [1] : vector<8x32xf32> to vector<8xf32>
    %47 = vector.shape_cast %46 : vector<8xf32> to vector<8x1xf32>
    %cst_40 = arith.constant 3.200000e+01 : f32
    %48 = vector.broadcast %cst_40 : f32 to vector<8x1xf32>
    %49 = arith.divf %47, %48 : vector<8x1xf32>
    %50 = vector.broadcast %49 : vector<8x1xf32> to vector<8x32xf32>
    %51 = arith.subf %43, %50 : vector<8x32xf32>
    %52 = arith.mulf %51, %51 : vector<8x32xf32>
    %cst_41 = arith.constant dense<0.000000e+00> : vector<8xf32>
    %53 = vector.multi_reduction <add>, %52, %cst_41 [1] : vector<8x32xf32> to vector<8xf32>
    %54 = vector.shape_cast %53 : vector<8xf32> to vector<8x1xf32>
    %cst_42 = arith.constant 3.200000e+01 : f32
    %55 = vector.broadcast %cst_42 : f32 to vector<8x1xf32>
    %56 = arith.divf %54, %55 : vector<8x1xf32>
    %cst_43 = arith.constant 9.99999974E-6 : f32
    %57 = vector.broadcast %cst_43 : f32 to vector<8x1xf32>
    %58 = arith.addf %56, %57 : vector<8x1xf32>
    %59 = math.rsqrt %58 : vector<8x1xf32>
    %60 = vector.broadcast %59 : vector<8x1xf32> to vector<8x32xf32>
    %61 = arith.mulf %51, %60 : vector<8x32xf32>
    %62 = vector.broadcast %44 : vector<1x32xf32> to vector<8x32xf32>
    %63 = arith.mulf %61, %62 : vector<8x32xf32>
    %64 = vector.broadcast %45 : vector<1x32xf32> to vector<8x32xf32>
    %65 = arith.addf %63, %64 : vector<8x32xf32>
    %c0_44 = arith.constant 0 : index
    %c0_45 = arith.constant 0 : index
    %66 = vector.load %arg13[%c0_44, %c0_45] : memref<32x128xf32, #tpu.memory_space<vmem>>, vector<32x128xf32>
    %cst_46 = arith.constant dense<0.000000e+00> : vector<8x128xf32>
    %67 = tpu.matmul %65, %66, %cst_46 {dimension_numbers = #tpu.dot_dimension_numbers<[1], [0], [0], [1], [0, 0, 1, 1], [], []>} : vector<8x32xf32>, vector<32x128xf32>, vector<8x128xf32> -> vector<8x128xf32>
    %c0_47 = arith.constant 0 : index
    %c0_48 = arith.constant 0 : index
    %68 = vector.load %arg14[%c0_47, %c0_48] : memref<1x128xf32, #tpu.memory_space<vmem>>, vector<1x128xf32>
    %69 = vector.broadcast %68 : vector<1x128xf32> to vector<8x128xf32>
    %70 = arith.addf %67, %69 : vector<8x128xf32>
    %cst_49 = arith.constant 0.000000e+00 : f32
    %71 = vector.broadcast %cst_49 : f32 to vector<8x128xf32>
    %72 = arith.maximumf %70, %71 : vector<8x128xf32>
    %c0_50 = arith.constant 0 : index
    %c0_51 = arith.constant 0 : index
    %73 = vector.load %arg15[%c0_50, %c0_51] : memref<128x32xf32, #tpu.memory_space<vmem>>, vector<128x32xf32>
    %cst_52 = arith.constant dense<0.000000e+00> : vector<8x32xf32>
    %74 = tpu.matmul %72, %73, %cst_52 {dimension_numbers = #tpu.dot_dimension_numbers<[1], [0], [0], [1], [0, 0, 1, 1], [], []>} : vector<8x128xf32>, vector<128x32xf32>, vector<8x32xf32> -> vector<8x32xf32>
    %c0_53 = arith.constant 0 : index
    %c0_54 = arith.constant 0 : index
    %75 = vector.load %arg16[%c0_53, %c0_54] : memref<1x32xf32, #tpu.memory_space<vmem>>, vector<1x32xf32>
    %76 = vector.broadcast %75 : vector<1x32xf32> to vector<8x32xf32>
    %77 = arith.addf %74, %76 : vector<8x32xf32>
    %78 = arith.addf %65, %77 : vector<8x32xf32>
    %c0_55 = arith.constant 0 : index
    %c0_56 = arith.constant 0 : index
    %79 = vector.load %arg17[%c0_55, %c0_56] : memref<1x32xf32, #tpu.memory_space<vmem>>, vector<1x32xf32>
    %c0_57 = arith.constant 0 : index
    %c0_58 = arith.constant 0 : index
    %80 = vector.load %arg18[%c0_57, %c0_58] : memref<1x32xf32, #tpu.memory_space<vmem>>, vector<1x32xf32>
    %cst_59 = arith.constant dense<0.000000e+00> : vector<8xf32>
    %81 = vector.multi_reduction <add>, %78, %cst_59 [1] : vector<8x32xf32> to vector<8xf32>
    %82 = vector.shape_cast %81 : vector<8xf32> to vector<8x1xf32>
    %cst_60 = arith.constant 3.200000e+01 : f32
    %83 = vector.broadcast %cst_60 : f32 to vector<8x1xf32>
    %84 = arith.divf %82, %83 : vector<8x1xf32>
    %85 = vector.broadcast %84 : vector<8x1xf32> to vector<8x32xf32>
    %86 = arith.subf %78, %85 : vector<8x32xf32>
    %87 = arith.mulf %86, %86 : vector<8x32xf32>
    %cst_61 = arith.constant dense<0.000000e+00> : vector<8xf32>
    %88 = vector.multi_reduction <add>, %87, %cst_61 [1] : vector<8x32xf32> to vector<8xf32>
    %89 = vector.shape_cast %88 : vector<8xf32> to vector<8x1xf32>
    %cst_62 = arith.constant 3.200000e+01 : f32
    %90 = vector.broadcast %cst_62 : f32 to vector<8x1xf32>
    %91 = arith.divf %89, %90 : vector<8x1xf32>
    %cst_63 = arith.constant 9.99999974E-6 : f32
    %92 = vector.broadcast %cst_63 : f32 to vector<8x1xf32>
    %93 = arith.addf %91, %92 : vector<8x1xf32>
    %94 = math.rsqrt %93 : vector<8x1xf32>
    %95 = vector.broadcast %94 : vector<8x1xf32> to vector<8x32xf32>
    %96 = arith.mulf %86, %95 : vector<8x32xf32>
    %97 = vector.broadcast %79 : vector<1x32xf32> to vector<8x32xf32>
    %98 = arith.mulf %96, %97 : vector<8x32xf32>
    %99 = vector.broadcast %80 : vector<1x32xf32> to vector<8x32xf32>
    %100 = arith.addf %98, %99 : vector<8x32xf32>
    %c0_64 = arith.constant 0 : index
    %c0_65 = arith.constant 0 : index
    %101 = vector.load %arg19[%c0_64, %c0_65] : memref<8x32xf32, #tpu.memory_space<vmem>>, vector<8x32xf32>
    tpu.vector_store %arg19[%c0_64, %c0_65], %100 {strides = array<i32>} : memref<8x32xf32, #tpu.memory_space<vmem>>, vector<8x32xf32>,
    return
  }
  func.func @transform_0(%arg0: i32) -> (i32, i32) {
    %c0_i32 = arith.constant 0 : i32
    %c0_i32_0 = arith.constant 0 : i32
    return %arg0, %c0_i32 : i32, i32
  }
  func.func @transform_1(%arg0: i32) -> (i32, i32) {
    %c0_i32 = arith.constant 0 : i32
    %c0_i32_0 = arith.constant 0 : i32
    %c0_i32_1 = arith.constant 0 : i32
    return %c0_i32, %c0_i32_0 : i32, i32
  }
  func.func @transform_2(%arg0: i32) -> (i32, i32, i32) {
    %c0_i32 = arith.constant 0 : i32
    %c0_i32_0 = arith.constant 0 : i32
    %c0_i32_1 = arith.constant 0 : i32
    %c0_i32_2 = arith.constant 0 : i32
    return %c0_i32, %c0_i32_0, %c0_i32_1 : i32, i32, i32
  }
  func.func @transform_3(%arg0: i32) -> (i32, i32, i32) {
    %c0_i32 = arith.constant 0 : i32
    %c0_i32_0 = arith.constant 0 : i32
    %c0_i32_1 = arith.constant 0 : i32
    %c0_i32_2 = arith.constant 0 : i32
    return %c0_i32, %c0_i32_0, %c0_i32_1 : i32, i32, i32
  }
  func.func @transform_4(%arg0: i32) -> (i32, i32, i32) {
    %c0_i32 = arith.constant 0 : i32
    %c0_i32_0 = arith.constant 0 : i32
    %c0_i32_1 = arith.constant 0 : i32
    %c0_i32_2 = arith.constant 0 : i32
    return %c0_i32, %c0_i32_0, %c0_i32_1 : i32, i32, i32
  }
  func.func @transform_5(%arg0: i32) -> (i32, i32, i32) {
    %c0_i32 = arith.constant 0 : i32
    %c0_i32_0 = arith.constant 0 : i32
    %c0_i32_1 = arith.constant 0 : i32
    %c0_i32_2 = arith.constant 0 : i32
    return %c0_i32, %c0_i32_0, %c0_i32_1 : i32, i32, i32
  }
  func.func @transform_6(%arg0: i32) -> (i32, i32, i32) {
    %c0_i32 = arith.constant 0 : i32
    %c0_i32_0 = arith.constant 0 : i32
    %c0_i32_1 = arith.constant 0 : i32
    %c0_i32_2 = arith.constant 0 : i32
    return %c0_i32, %c0_i32_0, %c0_i32_1 : i32, i32, i32
  }
  func.func @transform_7(%arg0: i32) -> (i32, i32, i32) {
    %c0_i32 = arith.constant 0 : i32
    %c0_i32_0 = arith.constant 0 : i32
    %c0_i32_1 = arith.constant 0 : i32
    %c0_i32_2 = arith.constant 0 : i32
    return %c0_i32, %c0_i32_0, %c0_i32_1 : i32, i32, i32
  }
  func.func @transform_8(%arg0: i32) -> (i32, i32, i32) {
    %c0_i32 = arith.constant 0 : i32
    %c0_i32_0 = arith.constant 0 : i32
    %c0_i32_1 = arith.constant 0 : i32
    %c0_i32_2 = arith.constant 0 : i32
    return %c0_i32, %c0_i32_0, %c0_i32_1 : i32, i32, i32
  }
  func.func @transform_9(%arg0: i32) -> (i32, i32) {
    %c0_i32 = arith.constant 0 : i32
    %c0_i32_0 = arith.constant 0 : i32
    %c0_i32_1 = arith.constant 0 : i32
    return %c0_i32, %c0_i32_0 : i32, i32
  }
  func.func @transform_10(%arg0: i32) -> (i32, i32) {
    %c0_i32 = arith.constant 0 : i32
    %c0_i32_0 = arith.constant 0 : i32
    %c0_i32_1 = arith.constant 0 : i32
    return %c0_i32, %c0_i32_0 : i32, i32
  }
  func.func @transform_11(%arg0: i32) -> (i32, i32) {
    %c0_i32 = arith.constant 0 : i32
    %c0_i32_0 = arith.constant 0 : i32
    %c0_i32_1 = arith.constant 0 : i32
    return %c0_i32, %c0_i32_0 : i32, i32
  }
  func.func @transform_12(%arg0: i32) -> (i32, i32) {
    %c0_i32 = arith.constant 0 : i32
    %c0_i32_0 = arith.constant 0 : i32
    %c0_i32_1 = arith.constant 0 : i32
    return %c0_i32, %c0_i32_0 : i32, i32
  }
  func.func @transform_13(%arg0: i32) -> (i32, i32) {
    %c0_i32 = arith.constant 0 : i32
    %c0_i32_0 = arith.constant 0 : i32
    %c0_i32_1 = arith.constant 0 : i32
    return %c0_i32, %c0_i32_0 : i32, i32
  }
  func.func @transform_14(%arg0: i32) -> (i32, i32) {
    %c0_i32 = arith.constant 0 : i32
    %c0_i32_0 = arith.constant 0 : i32
    %c0_i32_1 = arith.constant 0 : i32
    return %c0_i32, %c0_i32_0 : i32, i32
  }
  func.func @transform_15(%arg0: i32) -> (i32, i32) {
    %c0_i32 = arith.constant 0 : i32
    %c0_i32_0 = arith.constant 0 : i32
    %c0_i32_1 = arith.constant 0 : i32
    return %c0_i32, %c0_i32_0 : i32, i32
  }
  func.func @transform_16(%arg0: i32) -> (i32, i32) {
    %c0_i32 = arith.constant 0 : i32
    %c0_i32_0 = arith.constant 0 : i32
    %c0_i32_1 = arith.constant 0 : i32
    return %c0_i32, %c0_i32_0 : i32, i32
  }
  func.func @transform_17(%arg0: i32) -> (i32, i32) {
    %c0_i32 = arith.constant 0 : i32
    %c0_i32_0 = arith.constant 0 : i32
    %c0_i32_1 = arith.constant 0 : i32
    return %c0_i32, %c0_i32_0 : i32, i32
  }
  func.func @transform_18(%arg0: i32) -> (i32, i32) {
    %c0_i32 = arith.constant 0 : i32
    %c0_i32_0 = arith.constant 0 : i32
    return %arg0, %c0_i32 : i32, i32
  }
}

</mosaic_0001>

<bundles_post_ra>
// kernel: encoder_layer.1
= control target key start
LH: loop header
LB: loop body
LE: loop exit
PB: predicated region body
PF: predicated region fallthrough
CT: control target
= control target key end

     0   :  { %s4092_s0 = inlined_call_operand.vmem [shape: f32[16,32], index: 0, kind: input, shape index: {}]   ;;  %s4093_s1 = inlined_call_operand.vmem [shape: f32[8,8], index: 1, kind: input, shape index: {}]   ;;  %s4094_s2 = inlined_call_operand.vmem [shape: f32[4,32,8], index: 2, kind: input, shape index: {}]   ;;  %s4095_s3 = inlined_call_operand.vmem [shape: f32[4,1,8], index: 3, kind: input, shape index: {}]   ;;  %s4096_s4 = inlined_call_operand.vmem [shape: f32[4,32,8], index: 4, kind: input, shape index: {}]   ;;  %s4097_s5 = inlined_call_operand.vmem [shape: f32[4,1,8], index: 5, kind: input, shape index: {}]   ;;  %s4098_s6 = inlined_call_operand.vmem [shape: f32[4,32,8], index: 6, kind: input, shape index: {}]   ;;  %s4099_s7 = inlined_call_operand.vmem [shape: f32[4,1,8], index: 7, kind: input, shape index: {}]   ;;  %s4100_s8 = inlined_call_operand.vmem [shape: f32[4,8,32], index: 8, kind: input, shape index: {}]   ;;  %s4101_s9 = inlined_call_operand.vmem [shape: f32[1,32], index: 9, kind: input, shape index: {}]   ;;  %s4102_s10 = inlined_call_operand.vmem [shape: f32[1,32], index: 10, kind: input, shape index: {}]   ;;  %s4103_s11 = inlined_call_operand.vmem [shape: f32[1,32], index: 11, kind: input, shape index: {}]   ;;  %s4104_s12 = inlined_call_operand.vmem [shape: f32[32,128], index: 12, kind: input, shape index: {}]   ;;  %s4105_s13 = inlined_call_operand.vmem [shape: f32[1,128], index: 13, kind: input, shape index: {}]   ;;  %s4106_s14 = inlined_call_operand.vmem [shape: f32[128,32], index: 14, kind: input, shape index: {}]   ;;  %s4107_s15 = inlined_call_operand.vmem [shape: f32[1,32], index: 15, kind: input, shape index: {}]   ;;  %s4108_s16 = inlined_call_operand.vmem [shape: f32[1,32], index: 16, kind: input, shape index: {}]   ;;  %s4109_s17 = inlined_call_operand.vmem [shape: f32[1,32], index: 17, kind: input, shape index: {}]   ;;  %s4110_s18 = inlined_call_operand.hbm [shape: f32[16,32], index: 18, kind: output, shape index: {}]  }
   0x1   :  { %4119 = sst [smem:[#allocation11_spill]] %s4092_s0 }
   0x2   :  { %4120 = sst [smem:[#allocation12_spill]] %s4093_s1 }
   0x3   :  { %4121 = sst [smem:[#allocation13_spill]] %s4094_s2 }
   0x4   :  { %4122 = sst [smem:[#allocation14_spill]] %s4095_s3 }
   0x5   :  { %4123 = sst [smem:[#allocation15_spill]] %s4096_s4 }
   0x6   :  { %4124 = sst [smem:[#allocation16_spill]] %s4109_s17 }
   0x7   :  { %4125 = sst [smem:[#allocation17_spill]] %s4110_s18 }
   0x8   :  { %23 = vsyncpa [#allocation3], 0 }
   0x9   :  { %25 = vsyncpa [#allocation3 + $0x1], 0  ;;  %s3551_s27 = smov 0   ;;  %s3553_s28 = smov 0  }
   0xa   :  { %s3555_s29 = smov 0   ;;  %s3557_s30 = smov 0  }
   0xb LB: > { %4126 = sst [smem:[#allocation5_spill]] %s3438_s27  ;;  %s3572_s0 = sadd.s32 4294967295, %s3450_s30   ;;  %s3450_s30 = sphi %s3557_s30, %s4145_s30   ;;  %s3446_s29 = sphi %s3555_s29, %s4147_s29   ;;  %s3442_s28 = sphi %s3553_s28, %s4149_s28   ;;  %s3438_s27 = sphi %s3551_s27, %s4148_s27  }
   0xc   : > { %4127 = sst [smem:[#allocation6_spill]] %s3446_s29  ;;  %s2822_s19 = sadd.s32 4294967294, %s3450_s30  }
   0xd   : > { %4128 = sst [smem:[#allocation7_spill]] %s3450_s30  ;;  %s3576_s1 = sadd.s32 1, %s3450_s30  }
   0xe   : > { %4129 = sst [smem:[#allocation8_spill]] %s3576_s1  ;;  %s421_s20 = sadd.s32 1, %s3446_s29 }
   0xf   : > { %s418_s21 = ssub.s32 %s3450_s30, %s3576_s1  ;;  %p431_p0 = scmp.ne.s32.totalorder %s3446_s29, %s3442_s28 }
  0x10   : > { %p419_p1 = scmp.eq.s32.totalorder %s418_s21, 0  ;;  %p432_p2 = scmp.eq.s32.totalorder %s3572_s0, 1 }
  0x11   : > { %p437_p3 = scmp.ne.s32.totalorder %s3442_s28, %s3438_s27  ;;  %p438_p4 = scmp.eq.s32.totalorder %s2822_s19, 1 }
  0x12   : > { %s3587_s22 = scalar_select %p419_p1, %s3446_s29, %s421_s20  }
  0x13   : > { %p3589_p5 = por %p432_p2, %p431_p0  ;;  %p3593_p6 = por %p438_p4, %p437_p3 }
  0x14   : > { %4130 = sst [smem:[#allocation9_spill]] %s3587_s22  ;;  %p2825_p7 = scmp.ge.s32.totalorder %s3450_s30, 1 }
  0x15   : > { %s4132_s23 = scalar_select %p3593_p6, 1, 0 }
  0x16   : > { %p514_p8 = scmp.lt.s32.totalorder %s3450_s30, 3 }
  0x17   : > { %4133 = sst [smem:[#allocation10_spill]] %s4132_s23 }
  0x18   : > { %p515_p9 = pnand %p2825_p7, %p514_p8 }
  0x19   : > { %s4134_s26 = sld [smem:[#allocation13_spill]] (!%p515_p9)  ;;  %v3452_v3 = vmov (!%p515_p9), 0.0|0.0   ;;  %p567_p10 = scmp.lt.s32.totalorder (!%p515_p9), %s3572_s0, 1  ;;  %vm3453_vm0 = vmmov (!%p515_p9), 0   ;;  %v3454_v11 = vmov (!%p515_p9), 0.0   ;;  %vm617_vm1 = vcmask (!%p515_p9), 261120  }
  0x1a   : > { %518 = sbr.rel (%p515_p9) target bundleno = 2327 (0x917), region = 92  ;;  %3224 = vmatprep.subr.bf16.mxu0 (!%p515_p9), %v3452_v3  ;;  %3242 = vmatprep.subr.bf16.mxu1 (!%p515_p9), %v3452_v3  ;;  %s4135_s4 = sld [smem:[#allocation15_spill]] (!%p515_p9)  ;;  %v1229_v41 = vld [vmem:[%s4098_s6 + $0x20] sm:$0xff] (!%p515_p9)  ;;  %v1230_v42 = vld [vmem:[%s4098_s6 + $0x28] sm:$0xff] (!%p515_p9)  ;;  %v1231_v54 = vld [vmem:[%s4098_s6 + $0x30] sm:$0xff] (!%p515_p9)  ;;  %vm1549_vm2 = vcmask (!%p515_p9), 64512  }
  0x1b   : > { %2994 = vmatprep.mubr.msk.f32.mxu0 (!%p515_p9), %vm3453_vm0, %v3454_v11  ;;  %3027 = vmatprep.mubr.msk.f32.mxu1 (!%p515_p9), %vm3453_vm0, %v3454_v11  ;;  %s4136_s17 = sld [smem:[#allocation11_spill]] (!%p515_p9)  ;;  %v3279_v46 = vpack.c.bf16 (!%p515_p9), %v1230_v42, %v1229_v41  ;;  %v1232_v55 = vld [vmem:[%s4098_s6 + $0x38] sm:$0xff] (!%p515_p9)  ;;  %v1225_v57 = vld [vmem:[%s4098_s6] sm:$0xff] (!%p515_p9)  ;;  %v1226_v58 = vld [vmem:[%s4098_s6 + $0x8] sm:$0xff] (!%p515_p9)  ;;  %s4137_s3 = sld [smem:[#allocation14_spill]] (!%p515_p9) }
  0x1c   : > { %v3282_v56 = vpack.c.bf16 (!%p515_p9), %v1232_v55, %v1231_v54  ;;  %v1237_v59 = vld [vmem:[%s4098_s6 + $0x60] sm:$0xff] (!%p515_p9)  ;;  %v3273_v60 = vpack.c.bf16 (!%p515_p9), %v1226_v58, %v1225_v57  ;;  %v1238_v61 = vld [vmem:[%s4098_s6 + $0x68] sm:$0xff] (!%p515_p9)  ;;  %v1227_v63 = vld [vmem:[%s4098_s6 + $0x10] sm:$0xff] (!%p515_p9)  ;;  %s4138_s23 = sld [smem:[#allocation12_spill]] (!%p515_p9)  ;;  %s564_s24 = sand.u32 (!%p515_p9), 1, %s3442_s28  }
  0x1d   : > { %v3291_v62 = vpack.c.bf16 (!%p515_p9), %v1238_v61, %v1237_v59  ;;  %s2826_s27 = sshll.u32 (!%p515_p9), %s564_s24, 3  ;;  %s2877_s19 = sshll.u32 (!%p515_p9), %s3572_s0, 7 }
  0x1e   : > { %s566_s20 = scalar_lea.vmem (!%p515_p9), [#allocation2], %s2826_s27 }
  0x1f   : > { %v573_v0 = vld [vmem:[%s4134_s26] sm:$0xff] (!%p515_p9)  ;;  %v574_v1 = vld [vmem:[%s4134_s26 + $0x8] sm:$0xff] (!%p515_p9)  ;;  %v575_v6 = vld [vmem:[%s4134_s26 + $0x10] sm:$0xff] (!%p515_p9)  ;;  %s2763_s22 = sshll.u32 (!%p515_p9), %s566_s20, 4  ;;  %s4051_s22 = int_to_ptr.vmem [resolvable:$true] %s2763_s22 }
  0x20   : > { %v585_v2 = vld [vmem:[%s4134_s26 + $0x60] sm:$0xff] (!%p515_p9)  ;;  %v3225_v4 = vpack.c.bf16 (!%p515_p9), %v574_v1, %v573_v0  ;;  %v586_v5 = vld [vmem:[%s4134_s26 + $0x68] sm:$0xff] (!%p515_p9)  ;;  %v576_v7 = vld [vmem:[%s4134_s26 + $0x18] sm:$0xff] (!%p515_p9) }
  0x21   : > { %v3243_v8 = vpack.c.bf16 %v586_v5, %v585_v2  ;;  %v587_v9 = vld [vmem:[%s4134_s26 + $0x70] sm:$0xff]  ;;  %v588_v10 = vld [vmem:[%s4134_s26 + $0x78] sm:$0xff]  ;;  %v3228_v12 = vpack.c.bf16 %v576_v7, %v575_v6  ;;  %s568_s29 = scalar_select %p567_p10, %s3572_s0, 1  ;;  %v577_v14 = vld [vmem:[%s4134_s26 + $0x20] sm:$0xff] }
  0x22   : > { %3226 = vmatpush3.bf16.msra.mxu0 %v3225_v4  ;;  %v3246_v13 = vpack.c.bf16 %v588_v10, %v587_v9  ;;  %v578_v15 = vld [vmem:[%s4134_s26 + $0x28] sm:$0xff]  ;;  %v905_v16 = vld [vmem:[%s4135_s4 + $0x20] sm:$0xff]  ;;  %v579_v21 = vld [vmem:[%s4134_s26 + $0x30] sm:$0xff]  ;;  %s3455_s0 = smov [#allocation2]  }
  0x23   : > { %3244 = vmatpush3.bf16.msra.mxu1 %v3243_v8  ;;  %3227 = vmatprep.subr.bf16.mxu0 %v3452_v3  ;;  %s2827_s25 = sshll.u32 %s568_s29, 3  ;;  %v906_v17 = vld [vmem:[%s4135_s4 + $0x28] sm:$0xff]  ;;  %v3231_v19 = vpack.c.bf16 %v578_v15, %v577_v14  ;;  %v580_v22 = vld [vmem:[%s4134_s26 + $0x38] sm:$0xff]  ;;  %v907_v23 = vld [vmem:[%s4135_s4 + $0x30] sm:$0xff]  ;;  %s4140_s29 = sld [smem:[#allocation17_spill]] }
  0x24   : > { %3245 = vmatprep.subr.bf16.mxu1 %v3452_v3  ;;  %s570_s1 = scalar_lea.vmem %s4136_s17, %s2827_s25  ;;  %v3255_v20 = vpack.c.bf16 %v906_v17, %v905_v16  ;;  %v908_v24 = vld [vmem:[%s4135_s4 + $0x38] sm:$0xff]  ;;  %v3234_v25 = vpack.c.bf16 %v580_v22, %v579_v21  ;;  %v581_v27 = vld [vmem:[%s4134_s26 + $0x40] sm:$0xff]  ;;  %v582_v28 = vld [vmem:[%s4134_s26 + $0x48] sm:$0xff]  ;;  %s4139_s25 = sld [smem:[#allocation16_spill]] }
  0x25   : > { %v3648_v18 = vld [vmem:[%s570_s1] sm:$0xff]  ;;  %v3258_v26 = vpack.c.bf16 %v908_v24, %v907_v23  ;;  %v914_v30 = vld [vmem:[%s4135_s4 + $0x68] sm:$0xff]  ;;  %v3237_v31 = vpack.c.bf16 %v582_v28, %v581_v27  ;;  %v583_v33 = vld [vmem:[%s4134_s26 + $0x50] sm:$0xff]  ;;  %s3388_s17 = scalar_lea.vmem %s4051_s22, 128  ;;  %s3392_s27 = sshll.u32 %s3455_s0, 4  ;;  %s3393_s27 = int_to_ptr.vmem [resolvable:$false] %s3392_s27 }
  0x26   : > { %3229 = vmatpush3.bf16.msra.mxu0 %v3228_v12  ;;  %v913_v29 = vld [vmem:[%s4135_s4 + $0x60] sm:$0xff]  ;;  %v584_v34 = vld [vmem:[%s4134_s26 + $0x58] sm:$0xff]  ;;  %v915_v35 = vld [vmem:[%s4135_s4 + $0x70] sm:$0xff]  ;;  %p3389_p11 = scmp.ne.s32.totalorder %s4051_s22, %s3388_s17  ;;  %s3394_s18 = scalar_lea.vmem %s3393_s27, 256 }
  0x27   : > { %3247 = vmatpush3.bf16.msra.mxu1 %v3246_v13  ;;  %3230 = vmatprep.subr.bf16.mxu0 %v3452_v3  ;;  %v3267_v32 = vpack.c.bf16 %v914_v30, %v913_v29  ;;  %v916_v36 = vld [vmem:[%s4135_s4 + $0x78] sm:$0xff]  ;;  %v3240_v37 = vpack.c.bf16 %v584_v34, %v583_v33  ;;  %v901_v39 = vld [vmem:[%s4135_s4] sm:$0xff]  ;;  %v902_v40 = vld [vmem:[%s4135_s4 + $0x8] sm:$0xff]  ;;  %p3395_p0 = scmp.lt.s32.totalorder %s4051_s22, %s3393_s27  ;;  %p3396_p1 = scmp.lt.s32.totalorder %s3394_s18, %s3388_s17 }
  0x28   : > { %3254 = vmatprep.subr.bf16.mxu1 %v3452_v3  ;;  %v3270_v38 = vpack.c.bf16 %v916_v36, %v915_v35  ;;  %v3249_v43 = vpack.c.bf16 %v902_v40, %v901_v39  ;;  %v903_v44 = vld [vmem:[%s4135_s4 + $0x10] sm:$0xff]  ;;  %v904_v45 = vld [vmem:[%s4135_s4 + $0x18] sm:$0xff]  ;;  %v909_v48 = vld [vmem:[%s4135_s4 + $0x40] sm:$0xff]  ;;  %p3390_p12 = pnand %p3389_p11, %p3589_p5 }
  0x29   : > { %2995 = vmatmul.mubr.msk.f32.vlgmr.msra.gmra.mrb[0].mxu0 %vm617_vm1, %v3648_v18  ;;  %v3252_v47 = vpack.c.bf16 %v904_v45, %v903_v44  ;;  %v910_v49 = vld [vmem:[%s4135_s4 + $0x48] sm:$0xff]  ;;  %v911_v51 = vld [vmem:[%s4135_s4 + $0x50] sm:$0xff]  ;;  %v912_v52 = vld [vmem:[%s4135_s4 + $0x58] sm:$0xff]  ;;  %s4049_s4 = scalar_lea.hbm %s4140_s29, %s2877_s19  ;;  %p3397_p2 = por %p3396_p1, %p3395_p0 }
  0x2a   : > { %3232 = vmatpush3.bf16.msra.mxu0 %v3231_v19  ;;  %3028 = vmatmul.mubr.msk.f32.vlgmr.msra.gmra.mrb[0].mxu1 %vm617_vm1, %v3648_v18  ;;  %v3261_v50 = vpack.c.bf16 %v910_v49, %v909_v48  ;;  %v3264_v53 = vpack.c.bf16 %v912_v52, %v911_v51  ;;  %v1228_v0 = vld [vmem:[%s4098_s6 + $0x18] sm:$0xff]  ;;  %v1239_v2 = vld [vmem:[%s4098_s6 + $0x70] sm:$0xff]  ;;  %v1233_v6 = vld [vmem:[%s4098_s6 + $0x40] sm:$0xff]  ;;  %p3391_p13 = pneg %p3390_p12 }
  0x2b   : > { %3256 = vmatpush3.bf16.msra.mxu1 %v3255_v20  ;;  %3233 = vmatprep.subr.bf16.mxu0 %v3452_v3  ;;  %v3276_v1 = vpack.c.bf16 %v1228_v0, %v1227_v63  ;;  %v1240_v4 = vld [vmem:[%s4098_s6 + $0x78] sm:$0xff]  ;;  %v1234_v7 = vld [vmem:[%s4098_s6 + $0x48] sm:$0xff]  ;;  %v1235_v9 = vld [vmem:[%s4098_s6 + $0x50] sm:$0xff] }
  0x2c   : > { %3257 = vmatprep.subr.bf16.mxu1 %v3452_v3  ;;  %3005 = vmatprep.mubr.msk.f32.mxu0 %vm3453_vm0, %v3454_v11  ;;  %v3294_v5 = vpack.c.bf16 %v1240_v4, %v1239_v2  ;;  %v3285_v8 = vpack.c.bf16 %v1234_v7, %v1233_v6  ;;  %v1236_v10 = vld [vmem:[%s4098_s6 + $0x58] sm:$0xff]  ;;  %v2839_v22 = vld [vmem:[%s4097_s5 + $0x3] ss:$0 sm:$0xff]  ;;  %v2836_v30 = vld [vmem:[%s4097_s5] ss:$0 sm:$0xff]  ;;  %p3398_p3 = pnand %p3397_p2, %p3391_p13 }
  0x2d   : > { %3049 = vmatprep.mubr.msk.f32.mxu1 %vm3453_vm0, %v3454_v11  ;;  %v3288_v12 = vpack.c.bf16 %v1236_v10, %v1235_v9  ;;  %v2831_v23 = vld [vmem:[%s4137_s3 + $0x3] ss:$0 sm:$0xff]  ;;  %v2828_v33 = vld [vmem:[%s4137_s3] ss:$0 sm:$0xff]  ;;  %v2838_v39 = vld [vmem:[%s4097_s5 + $0x2] ss:$0 sm:$0xff] }
  0x2e   : > { %3235 = vmatpush3.bf16.msra.mxu0 %v3234_v25  ;;  %v2830_v42 = vld [vmem:[%s4137_s3 + $0x2] ss:$0 sm:$0xff] }
  0x2f   : > { %3259 = vmatpush3.bf16.msra.mxu1 %v3258_v26  ;;  %3236 = vmatprep.subr.bf16.mxu0 %v3452_v3  ;;  %v572_v63 = vld [vmem:[%s4138_s23] sm:$0xff]  ;;  %s2750_s23 = scalar_lea.sflag [#allocation3], %s564_s24 }
  0x30   : > { %3266 = vmatprep.subr.bf16.mxu1 %v3452_v3 }
  0x31   : > { %3006 = vmatmul.mubr.msk.f32.vlgmr.msra.gmra.mrb[2].mxu0 %vm617_vm1, %v3648_v18 }
  0x32   : > { %3238 = vmatpush3.bf16.msra.mxu0 %v3237_v31  ;;  %3050 = vmatmul.mubr.msk.f32.vlgmr.msra.gmra.mrb[2].mxu1 %vm617_vm1, %v3648_v18  ;;  %v2837_v31 = vld [vmem:[%s4097_s5 + $0x1] ss:$0 sm:$0xff] }
  0x33   : > { %3268 = vmatpush3.bf16.msra.mxu1 %v3267_v32  ;;  %3239 = vmatprep.subr.bf16.mxu0 %v3452_v3 }
  0x34   : > { %3269 = vmatprep.subr.bf16.mxu1 %v3452_v3  ;;  %3016 = vmatprep.mubr.msk.f32.mxu0 %vm3453_vm0, %v3454_v11 }
  0x35   : > { %3071 = vmatprep.mubr.msk.f32.mxu1 %vm3453_vm0, %v3454_v11 }
  0x36   : > { %3241 = vmatpush3.bf16.msra.mxu0 %v3240_v37 }
  0x37   : > { %3271 = vmatpush3.bf16.msra.mxu1 %v3270_v38  ;;  %3248 = vmatprep.subr.bf16.mxu0 %v3452_v3  ;;  %v2829_v38 = vld [vmem:[%s4137_s3 + $0x1] ss:$0 sm:$0xff]  ;;  %s4141_s3 = smov %s4140_s29 }
  0x38   : > { %3278 = vmatprep.subr.bf16.mxu1 %v3452_v3 }
  0x39   : > { %3017 = vmatmul.mubr.msk.f32.vlgmr.msra.gmra.mrb[4].mxu0 %vm617_vm1, %v3648_v18 }
  0x3a   : > { %3250 = vmatpush3.bf16.msra.mxu0 %v3249_v43  ;;  %3072 = vmatmul.mubr.msk.f32.vlgmr.msra.gmra.mrb[4].mxu1 %vm617_vm1, %v3648_v18 }
  0x3b   : > { %3251 = vmatprep.subr.bf16.mxu0 %v3452_v3  ;;  %3038 = vmatprep.mubr.msk.f32.mxu0 %vm3453_vm0, %v3454_v11 }
  0x3c   : > { %3280 = vmatpush3.bf16.msra.mxu1 %v3279_v46  ;;  %3093 = vmatprep.mubr.msk.f32.mxu1 %vm3453_vm0, %v3454_v11  ;;  %v2845_v46 = vld [vmem:[%s4099_s7 + $0x1] ss:$0 sm:$0xff] }
  0x3d   : > { %3281 = vmatprep.subr.bf16.mxu1 %v3452_v3 }
  0x3e   : > { %3253 = vmatpush3.bf16.msra.mxu0 %v3252_v47 }
  0x3f   : > { %3260 = vmatprep.subr.bf16.mxu0 %v3452_v3 }
  0x40   : > { %3283 = vmatpush3.bf16.msra.mxu1 %v3282_v56 }
  0x41   : > { %3039 = vmatmul.mubr.msk.f32.vlgmr.msra.gmra.mrb[6].mxu0 %vm617_vm1, %v3648_v18  ;;  %3290 = vmatprep.subr.bf16.mxu1 %v3452_v3 }
  0x42   : > { %3262 = vmatpush3.bf16.msra.mxu0 %v3261_v50  ;;  %3060 = vmatprep.mubr.msk.f32.mxu0 %vm3453_vm0, %v3454_v11  ;;  %v2844_v50 = vld [vmem:[%s4099_s7] ss:$0 sm:$0xff] }
  0x43   : > { %3263 = vmatprep.subr.bf16.mxu0 %v3452_v3  ;;  %3094 = vmatmul.mubr.msk.f32.vlgmr.msra.gmra.mrb[6].mxu1 %vm617_vm1, %v3648_v18 }
  0x44   : > { %3292 = vmatpush3.bf16.msra.mxu1 %v3291_v62  ;;  %3115 = vmatprep.mubr.msk.f32.mxu1 %vm3453_vm0, %v3454_v11 }
  0x45   : > { %3293 = vmatprep.subr.bf16.mxu1 %v3452_v3 }
  0x46   : > { %3265 = vmatpush3.bf16.msra.mxu0 %v3264_v53 }
  0x47   : > { %3272 = vmatprep.subr.bf16.mxu0 %v3452_v3 }
  0x48   : > { %3295 = vmatpush3.bf16.msra.mxu1 %v3294_v5 }
  0x49   : > { %3061 = vmatmul.mubr.msk.f32.vlgmr.msra.gmra.mrb[8].mxu0 %vm617_vm1, %v3648_v18  ;;  %3133 = vmatprep.subr.mxu1 %v3454_v11 }
  0x4a   : > { %3082 = vmatprep.mubr.msk.f32.mxu0 %vm3453_vm0, %v3454_v11  ;;  %3274 = vmatpush3.bf16.msra.mxu0 %v3273_v60 }
  0x4b   : > { %3275 = vmatprep.subr.bf16.mxu0 %v3452_v3  ;;  %3116 = vmatmul.mubr.msk.f32.vlgmr.msra.gmra.mrb[8].mxu1 %vm617_vm1, %v3648_v18 }
  0x4c   : > { %3135 = vmatprep.mubr.msk.f32.mxu1 %vm3453_vm0, %v3454_v11 }
  0x4e   : > { %3277 = vmatpush3.bf16.msra.mxu0 %v3276_v1 }
  0x4f   : > { %3284 = vmatprep.subr.bf16.mxu0 %v3452_v3 }
  0x51   : > { %3083 = vmatmul.mubr.msk.f32.vlgmr.msra.gmra.mrb[10].mxu0 %vm617_vm1, %v3648_v18 }
  0x52   : > { %3286 = vmatpush3.bf16.msra.mxu0 %v3285_v8  ;;  %3104 = vmatprep.mubr.msk.f32.mxu0 %vm3453_vm0, %v3454_v11 }
  0x53   : > { %3287 = vmatprep.subr.bf16.mxu0 %v3452_v3 }
  0x56   : > { %3289 = vmatpush3.bf16.msra.mxu0 %v3288_v12 }
  0x57   : > { %3118 = vmatprep.subr.mxu0 %v3454_v11 }
  0x59   : > { %3105 = vmatmul.mubr.msk.f32.vlgmr.msra.gmra.mrb[12].mxu0 %vm617_vm1, %v3648_v18 }
  0x5a   : > { %3120 = vmatprep.mubr.msk.f32.mxu0 %vm3453_vm0, %v3454_v11 }
  0xfc   : > { %v687_v13 = vpop.f32.mrb[0].mxu0 }
  0xfd   : > { %v2996_v14 = vpop.f32.mrb[1].mxu0  ;;  %v897_v15 = vpop.f32.mrb[0].mxu1  ;;  %v688_v37 = vadd.f32 %v2828_v33, %v687_v13 }
  0xfe   : > { %v3029_v16 = vpop.f32.mrb[1].mxu1  ;;  %v898_v29 = vadd.f32 %v2831_v23, %v897_v15 }
 0x104   : > { %v757_v17 = vpop.f32.mrb[2].mxu0 }
 0x105   : > { %v3007_v19 = vpop.f32.mrb[3].mxu0  ;;  %v1081_v20 = vpop.f32.mrb[2].mxu1  ;;  %v758_v40 = vadd.f32 %v2829_v38, %v757_v17 }
 0x106   : > { %v3051_v21 = vpop.f32.mrb[3].mxu1  ;;  %v1082_v36 = vadd.f32 %v2837_v31, %v1081_v20 }
 0x10c   : > { %v827_v24 = vpop.f32.mrb[4].mxu0 }
 0x10d   : > { %v3018_v25 = vpop.f32.mrb[5].mxu0  ;;  %v1221_v26 = vpop.f32.mrb[4].mxu1  ;;  %v828_v45 = vadd.f32 %v2830_v42, %v827_v24 }
 0x10e   : > { %v1222_v27 = vadd.f32 %v2839_v22, %v1221_v26  ;;  %v3073_v28 = vpop.f32.mrb[5].mxu1 }
 0x110   : > { %3134 = vmatpush3.xpose.msk.msra.mxu1 %vm1549_vm2, %v1222_v27 }
 0x111   : > { %3143 = vmatprep.subr.mxu1 %v3454_v11 }
 0x113   : > { %3136 = vmatmul.mubr.msk.f32.vlgmr.msra.gmra.mrb[10].mxu1 %vm1549_vm2, %v898_v29 }
 0x114   : > { %v1011_v32 = vpop.f32.mrb[6].mxu0  ;;  %3145 = vmatprep.mubr.msk.f32.mxu1 %vm3453_vm0, %v3454_v11 }
 0x115   : > { %v1012_v34 = vadd.f32 %v2836_v30, %v1011_v32  ;;  %v3040_v35 = vpop.f32.mrb[7].mxu0 }
 0x116   : > { %v1405_v47 = vpop.f32.mrb[6].mxu1 }
 0x117   : > { %3119 = vmatpush3.xpose.msk.msra.mxu0 %vm1549_vm2, %v1012_v34  ;;  %v1406_v48 = vadd.f32 %v2845_v46, %v1405_v47  ;;  %v3095_v49 = vpop.f32.mrb[7].mxu1  ;;  %v2847_v46 = vld [vmem:[%s4099_s7 + $0x3] ss:$0 sm:$0xff] }
 0x118   : > { %3123 = vmatprep.subr.mxu0 %v3454_v11 }
 0x119   : > { %3144 = vmatpush3.msra.mxu1 %v1406_v48 }
 0x11a   : > { %3121 = vmatmul.mubr.msk.f32.vlgmr.msra.gmra.mrb[14].mxu0 %vm1549_vm2, %v688_v37  ;;  %3153 = vmatprep.subr.mxu1 %v3454_v11 }
 0x11b   : > { %3124 = vmatpush3.xpose.msk.msra.mxu0 %vm1549_vm2, %v1082_v36  ;;  %3125 = vmatprep.mubr.msk.f32.mxu0 %vm3453_vm0, %v3454_v11 }
 0x11c   : > { %v1151_v41 = vpop.f32.mrb[8].mxu0  ;;  %3128 = vmatprep.subr.mxu0 %v3454_v11 }
 0x11d   : > { %v1152_v43 = vadd.f32 %v2838_v39, %v1151_v41  ;;  %v3062_v44 = vpop.f32.mrb[9].mxu0  ;;  %v2846_v41 = vld [vmem:[%s4099_s7 + $0x2] ss:$0 sm:$0xff] }
 0x11e   : > { %3126 = vmatmul.mubr.msk.f32.vlgmr.msra.gmra.mrb[16].mxu0 %vm1549_vm2, %v758_v40  ;;  %v3879_v54 = vpop.f32.mrb[8].mxu1 }
 0x11f   : > { %3129 = vmatpush3.xpose.msk.msra.mxu0 %vm1549_vm2, %v1152_v43  ;;  %3130 = vmatprep.mubr.msk.f32.mxu0 %vm3453_vm0, %v3454_v11  ;;  %v3117_v55 = vpop.f32.mrb[9].mxu1  ;;  %v1546_v49 = vadd.f32 %v2847_v46, %v3879_v54  ;;  %v2198_v54 = vld [vmem:[%s4100_s8] sm:$0xff]  ;;  %v2634_v46 = vld [vmem:[%s4106_s14 + $0x48] sm:$0xff] }
 0x120   : > { %3138 = vmatprep.subr.mxu0 %v3454_v11  ;;  %v2199_v55 = vld [vmem:[%s4100_s8 + $0x8] sm:$0xff] }
 0x122   : > { %3131 = vmatmul.mubr.msk.f32.vlgmr.msra.gmra.mrb[18].mxu0 %vm1549_vm2, %v828_v45 }
 0x123   : > { %3140 = vmatprep.mubr.msk.f32.mxu0 %vm3453_vm0, %v3454_v11 }
 0x124   : > { %v1335_v51 = vpop.f32.mrb[10].mxu0 }
 0x125   : > { %v1336_v52 = vadd.f32 %v2844_v50, %v1335_v51  ;;  %v3084_v53 = vpop.f32.mrb[11].mxu0 }
 0x127   : > { %3139 = vmatpush3.msra.mxu0 %v1336_v52 }
 0x128   : > { %3148 = vmatprep.subr.mxu0 %v3454_v11 }
 0x12c   : > { %v3882_v56 = vpop.f32.mrb[12].mxu0 }
 0x12d   : > { %v3106_v57 = vpop.f32.mrb[13].mxu0  ;;  %v1476_v45 = vadd.f32 %v2846_v41, %v3882_v56  ;;  %v2200_v56 = vld [vmem:[%s4100_s8 + $0x10] sm:$0xff] }
 0x1e6   : > { %v1850_v58 = vpop.f32.mrb[10].mxu1 }
 0x1e7   : > { %v3137_v59 = vpop.f32.mrb[11].mxu1  ;;  %v1857_v8 = vmul.f32 0.35355338, %v1850_v58 }
 0x1e8   : > { %v2201_v59 = vld [vmem:[%s4100_s8 + $0x18] sm:$0xff] }
 0x1e9   : > { %v1861_v15 = vadd.f32 %v1857_v8, %v572_v63 }
 0x1eb   : > { %v1871_v16 = vsel %vm1549_vm2, %v1861_v15, -inf }
 0x1ed   : > { %v1622_v60 = vpop.f32.mrb[14].mxu0 }
 0x1ee   : > { %v1854_v61 = vmul.f32 0.35355338, %v1622_v60  ;;  %v3122_v62 = vpop.f32.mrb[15].mxu0 }
 0x1f0   : > { %v1858_v0 = vadd.f32 %v1854_v61, %v572_v63 }
 0x1f1   : > { %v1698_v1 = vpop.f32.mrb[16].mxu0 }
 0x1f2   : > { %v1855_v2 = vmul.f32 0.35355338, %v1698_v1  ;;  %v3127_v4 = vpop.f32.mrb[17].mxu0  ;;  %v1862_v5 = vsel %vm1549_vm2, %v1858_v0, -inf }
 0x1f3   : > { %1863 = vmax.xlane.f32.xlu0 %v1862_v5 }
 0x1f4   : > { %v1859_v6 = vadd.f32 %v1855_v2, %v572_v63 }
 0x1f5   : > { %v1774_v7 = vpop.f32.mrb[18].mxu0 }
 0x1f6   : > { %v1856_v9 = vmul.f32 0.35355338, %v1774_v7  ;;  %v3132_v10 = vpop.f32.mrb[19].mxu0  ;;  %v1865_v12 = vsel %vm1549_vm2, %v1859_v6, -inf }
 0x1f7   : > { %1866 = vmax.xlane.f32.xlu0 %v1865_v12 }
 0x1f8   : > { %v1860_v13 = vadd.f32 %v1856_v9, %v572_v63 }
 0x1fa   : > { %v1868_v14 = vsel %vm1549_vm2, %v1860_v13, -inf }
 0x1fb   : > { %1869 = vmax.xlane.f32.xlu1 %v1868_v14 }
 0x1ff   : > { %1872 = vmax.xlane.f32.xlu1 %v1871_v16 }
 0x280   : > { %v1864_v17 = vpop.xlane.xlu0 %1863 }
 0x281   : > { %v1874_v19 = vsub.f32 %v1858_v0, %v1864_v17 }
 0x283   : > { %v1878_v20 = vmul.f32 1.442695, %v1874_v19 }
 0x284   : > { %v1867_v21 = vpop.xlane.xlu0 %1866 }
 0x285   : > { %3368 = vpow2.f32 %v1878_v20  ;;  %v1875_v22 = vsub.f32 %v1859_v6, %v1867_v21 }
 0x287   : > { %v1880_v23 = vmul.f32 1.442695, %v1875_v22 }
 0x288   : > { %v1870_v24 = vpop.xlane.xlu1 %1869 }
 0x289   : > { %3370 = vpow2.f32 %v1880_v23  ;;  %v1876_v25 = vsub.f32 %v1860_v13, %v1870_v24 }
 0x28b   : > { %v1882_v26 = vmul.f32 1.442695, %v1876_v25 }
 0x28c   : > { %v1873_v27 = vpop.xlane.xlu1 %1872 }
 0x28d   : > { %3372 = vpow2.f32 %v1882_v26  ;;  %v1877_v28 = vsub.f32 %v1861_v15, %v1873_v27 }
 0x28f   : > { %v3369_v29 = vpop.eup %3368  ;;  %v1884_v30 = vmul.f32 1.442695, %v1877_v28  ;;  %v2540_v28 = vld [vmem:[%s4104_s12] sm:$0xff] }
 0x290   : > { %v1886_v31 = vsel %vm1549_vm2, %v3369_v29, 0.0 }
 0x291   : > { %3374 = vpow2.f32 %v1884_v30  ;;  %1887 = vadd.xlane.f32.xlu0 %v1886_v31  ;;  %v2543_v31 = vld [vmem:[%s4104_s12 + $0x18] sm:$0xff] }
 0x293   : > { %v3371_v32 = vpop.eup %3370 }
 0x294   : > { %v1889_v33 = vsel %vm1549_vm2, %v3371_v32, 0.0 }
 0x295   : > { %1890 = vadd.xlane.f32.xlu1 %v1889_v33  ;;  %v2625_v33 = vld [vmem:[%s4106_s14] sm:$0xff] }
 0x297   : > { %v3373_v34 = vpop.eup %3372 }
 0x298   : > { %v1892_v35 = vsel %vm1549_vm2, %v3373_v34, 0.0 }
 0x299   : > { %1893 = vadd.xlane.f32.xlu0 %v1892_v35  ;;  %v2627_v35 = vld [vmem:[%s4106_s14 + $0x10] sm:$0xff] }
 0x29b   : > { %v3375_v36 = vpop.eup %3374 }
 0x29c   : > { %v1895_v37 = vsel %vm1549_vm2, %v3375_v36, 0.0 }
 0x29d   : > { %1896 = vadd.xlane.f32.xlu1 %v1895_v37  ;;  %v2628_v37 = vld [vmem:[%s4106_s14 + $0x18] sm:$0xff] }
 0x31e   : > { %v1888_v38 = vpop.xlane.xlu0 %1887 }
 0x31f   : > { %3376 = vrcp.f32 %v1888_v38  ;;  %v3306_v38 = vpack.c.bf16 %v2628_v37, %v2627_v35 }
 0x322   : > { %v1891_v39 = vpop.xlane.xlu1 %1890 }
 0x323   : > { %3378 = vrcp.f32 %v1891_v39  ;;  %v2629_v39 = vld [vmem:[%s4106_s14 + $0x20] sm:$0xff] }
 0x326   : > { %v1894_v40 = vpop.xlane.xlu0 %1893 }
 0x327   : > { %3380 = vrcp.f32 %v1894_v40  ;;  %v2630_v40 = vld [vmem:[%s4106_s14 + $0x28] sm:$0xff] }
 0x328   : > { %v3309_v41 = vpack.c.bf16 %v2630_v40, %v2629_v39 }
 0x329   : > { %v3377_v42 = vpop.eup %3376 }
 0x32a   : > { %v1899_v43 = vmul.f32 %v3377_v42, %v3369_v29  ;;  %v1897_v44 = vpop.xlane.xlu1 %1896  ;;  %v2541_v29 = vld [vmem:[%s4104_s12 + $0x8] sm:$0xff]  ;;  %v2631_v42 = vld [vmem:[%s4106_s14 + $0x30] sm:$0xff] }
 0x32b   : > { %3382 = vrcp.f32 %v1897_v44  ;;  %v3297_v30 = vpack.c.bf16 %v2541_v29, %v2540_v28 }
 0x32c   : > { %3141 = vmatmul.mubr.msk.f32.vlgmr.msra.gmra.mrb[20].mxu0 %vm1549_vm2, %v1899_v43  ;;  %v2632_v43 = vld [vmem:[%s4106_s14 + $0x38] sm:$0xff] }
 0x32d   : > { %v3379_v47 = vpop.eup %3378  ;;  %3149 = vmatpush3.msra.mxu0 %v1476_v45  ;;  %3150 = vmatprep.mubr.msk.f32.mxu0 %vm3453_vm0, %v3454_v11  ;;  %v3312_v44 = vpack.c.bf16 %v2632_v43, %v2631_v42  ;;  %v2633_v45 = vld [vmem:[%s4106_s14 + $0x40] sm:$0xff] }
 0x32e   : > { %v1901_v48 = vmul.f32 %v3379_v47, %v3371_v32  ;;  %3158 = vmatprep.subr.mxu0 %v3454_v11  ;;  %v3315_v47 = vpack.c.bf16 %v2634_v46, %v2633_v45 }
 0x330   : > { %3146 = vmatmul.mubr.msk.f32.vlgmr.msra.gmra.mrb[12].mxu1 %vm1549_vm2, %v1901_v48  ;;  %v2635_v48 = vld [vmem:[%s4106_s14 + $0x50] sm:$0xff] }
 0x331   : > { %v3381_v50 = vpop.eup %3380  ;;  %3154 = vmatpush3.msra.mxu1 %v1546_v49  ;;  %3155 = vmatprep.mubr.msk.f32.mxu1 %vm3453_vm0, %v3454_v11  ;;  %v2636_v49 = vld [vmem:[%s4106_s14 + $0x58] sm:$0xff] }
 0x332   : > { %v1903_v51 = vmul.f32 %v3381_v50, %v3373_v34  ;;  %3163 = vmatprep.subr.mxu1 %v3454_v11  ;;  %v2626_v34 = vld [vmem:[%s4106_s14 + $0x8] sm:$0xff]  ;;  %v3318_v50 = vpack.c.bf16 %v2636_v49, %v2635_v48 }
 0x334   : > { %3151 = vmatmul.mubr.msk.f32.vlgmr.msra.gmra.mrb[22].mxu0 %vm1549_vm2, %v1903_v51  ;;  %v2637_v51 = vld [vmem:[%s4106_s14 + $0x60] sm:$0xff] }
 0x335   : > { %v3383_v52 = vpop.eup %3382  ;;  %3160 = vmatprep.mubr.msk.f32.mxu0 %vm3453_vm0, %v3454_v11  ;;  %3159 = vmatpush3.msra.mxu0 %v2198_v54 }
 0x336   : > { %v1905_v53 = vmul.f32 %v3383_v52, %v3375_v36  ;;  %3168 = vmatprep.subr.mxu0 %v3454_v11  ;;  %v3303_v36 = vpack.c.bf16 %v2626_v34, %v2625_v33  ;;  %v2638_v52 = vld [vmem:[%s4106_s14 + $0x68] sm:$0xff] }
 0x338   : > { %3156 = vmatmul.mubr.msk.f32.vlgmr.msra.gmra.mrb[14].mxu1 %vm1549_vm2, %v1905_v53  ;;  %v3321_v53 = vpack.c.bf16 %v2638_v52, %v2637_v51 }
 0x339   : > { %3165 = vmatprep.mubr.msk.f32.mxu1 %vm3453_vm0, %v3454_v11  ;;  %3164 = vmatpush3.msra.mxu1 %v2199_v55 }
 0x33a   : > { %3173 = vmatprep.subr.mxu1 %v3454_v11 }
 0x3ff   : > { %v1975_v57 = vpop.f32.mrb[20].mxu0 }
 0x400   : > { %v3142_v58 = vpop.f32.mrb[21].mxu0  ;;  %3161 = vmatmul.mubr.msk.f32.vlgmr.msra.gmra.mrb[24].mxu0 %vm1549_vm2, %v1975_v57 }
 0x401   : > { %3169 = vmatpush3.msra.mxu0 %v2200_v56  ;;  %3170 = vmatprep.mubr.msk.f32.mxu0 %vm3453_vm0, %v3454_v11  ;;  %v2869_v58 = vld [vmem:[%s4102_s10] ss:$0 sm:$0xff] }
 0x402   : > { %3296 = vmatprep.subr.bf16.mxu0 %v3452_v3 }
 0x403   : > { %v2048_v60 = vpop.f32.mrb[12].mxu1 }
 0x404   : > { %v3147_v61 = vpop.f32.mrb[13].mxu1  ;;  %3166 = vmatmul.mubr.msk.f32.vlgmr.msra.gmra.mrb[16].mxu1 %vm1549_vm2, %v2048_v60  ;;  %v2870_v60 = vld [vmem:[%s4103_s11] ss:$0 sm:$0xff] }
 0x405   : > { %3174 = vmatpush3.msra.mxu1 %v2201_v59  ;;  %3175 = vmatprep.mubr.msk.f32.mxu1 %vm3453_vm0, %v3454_v11 }
 0x406   : > { %3302 = vmatprep.subr.bf16.mxu1 %v3452_v3 }
 0x407   : > { %v2121_v62 = vpop.f32.mrb[22].mxu0 }
 0x408   : > { %v3152_v63 = vpop.f32.mrb[23].mxu0  ;;  %3171 = vmatmul.mubr.msk.f32.vlgmr.msra.gmra.mrb[26].mxu0 %vm1549_vm2, %v2121_v62 }
 0x409   : > { %3186 = vmatprep.mubr.msk.f32.mxu0 %vm3453_vm0, %v3454_v11  ;;  %3298 = vmatpush3.bf16.msra.mxu0 %v3297_v30  ;;  %v2640_v63 = vld [vmem:[%s4106_s14 + $0x78] sm:$0xff] }
 0x40a   : > { %3299 = vmatprep.subr.bf16.mxu0 %v3452_v3 }
 0x40b   : > { %v2194_v0 = vpop.f32.mrb[14].mxu1 }
 0x40c   : > { %v3157_v1 = vpop.f32.mrb[15].mxu1  ;;  %3176 = vmatmul.mubr.msk.f32.vlgmr.msra.gmra.mrb[18].mxu1 %vm1549_vm2, %v2194_v0 }
 0x40d   : > { %3221 = vmatprep.mubr.msk.f32.mxu1 %vm3453_vm0, %v3454_v11  ;;  %v2868_v11 = vld [vmem:[%s4101_s9] ss:$0 sm:$0xff]  ;;  %3304 = vmatpush3.bf16.msra.mxu1 %v3303_v36 }
 0x40e   : > { %3305 = vmatprep.subr.bf16.mxu1 %v3452_v3  ;;  %v2871_v1 = vld [vmem:[%s4105_s13] ss:$0 sm:$0xff] }
 0x411   : > { %3307 = vmatpush3.bf16.msra.mxu1 %v3306_v38 }
 0x412   : > { %3308 = vmatprep.subr.bf16.mxu1 %v3452_v3 }
 0x415   : > { %3310 = vmatpush3.bf16.msra.mxu1 %v3309_v41 }
 0x416   : > { %3311 = vmatprep.subr.bf16.mxu1 %v3452_v3 }
 0x419   : > { %3313 = vmatpush3.bf16.msra.mxu1 %v3312_v44 }
 0x41a   : > { %3314 = vmatprep.subr.bf16.mxu1 %v3452_v3 }
 0x41d   : > { %3316 = vmatpush3.bf16.msra.mxu1 %v3315_v47 }
 0x41e   : > { %3317 = vmatprep.subr.bf16.mxu1 %v3452_v3 }
 0x421   : > { %3319 = vmatpush3.bf16.msra.mxu1 %v3318_v50 }
 0x422   : > { %3320 = vmatprep.subr.bf16.mxu1 %v3452_v3 }
 0x425   : > { %3322 = vmatpush3.bf16.msra.mxu1 %v3321_v53 }
 0x426   : > { %3323 = vmatprep.subr.bf16.mxu1 %v3452_v3  ;;  %v2639_v3 = vld [vmem:[%s4106_s14 + $0x70] sm:$0xff] }
 0x427   : > { %v3324_v0 = vpack.c.bf16 %v2640_v63, %v2639_v3 }
 0x429   : > { %3325 = vmatpush3.bf16.msra.mxu1 %v3324_v0 }
 0x4d3   : > { %v2271_v2 = vpop.f32.mrb[24].mxu0 }
 0x4d4   : > { %v3162_v4 = vpop.f32.mrb[25].mxu0  ;;  %v2494_v6 = vsel %vm617_vm1, %v2271_v2, 0.0 }
 0x4d7   : > { %v2344_v5 = vpop.f32.mrb[16].mxu1 }
 0x4d8   : > { %v2495_v7 = vsel %vm617_vm1, %v2344_v5, 0.0  ;;  %v3167_v8 = vpop.f32.mrb[17].mxu1 }
 0x4d9   : > { %v2496_v9 = vadd.f32 %v2495_v7, %v2494_v6  ;;  %v2873_v7 = vld [vmem:[%s4107_s15] ss:$0 sm:$0xff] }
 0x4db   : > { %v2417_v10 = vpop.f32.mrb[26].mxu0 }
 0x4dc   : > { %v2497_v12 = vsel %vm617_vm1, %v2417_v10, 0.0  ;;  %v3172_v13 = vpop.f32.mrb[27].mxu0 }
 0x4dd   : > { %v2498_v14 = vadd.f32 %v2497_v12, %v2496_v9 }
 0x4df   : > { %v2490_v15 = vpop.f32.mrb[18].mxu1 }
 0x4e0   : > { %v2499_v16 = vsel %vm617_vm1, %v2490_v15, 0.0  ;;  %v3177_v17 = vpop.f32.mrb[19].mxu1 }
 0x4e1   : > { %v2500_v19 = vadd.f32 %v2499_v16, %v2498_v14 }
 0x4e3   : > { %v2508_v20 = vadd.f32 %v2868_v11, %v2500_v19 }
 0x4e5   : > { %v2509_v21 = vadd.f32 %v2508_v20, %v3648_v18  ;;  %v2542_v18 = vld [vmem:[%s4104_s12 + $0x10] sm:$0xff] }
 0x4e6   : > { %v3300_v32 = vpack.c.bf16 %v2543_v31, %v2542_v18 }
 0x4e7   : > { %v2512_v22 = vsel %vm617_vm1, %v2509_v21, 0.0 }
 0x4e8   : > { %2513 = vadd.xlane.f32.xlu0 %v2512_v22  ;;  %3301 = vmatpush3.bf16.msra.mxu0 %v3300_v32 }
 0x575   : > { %v2514_v23 = vpop.xlane.xlu0 %2513 }
 0x576   : > { %v2516_v24 = vmul.f32 0.03125, %v2514_v23  ;;  %v2874_v23 = vld [vmem:[%s4108_s16] ss:$0 sm:$0xff] }
 0x578   : > { %v2517_v25 = vsub.f32 %v2509_v21, %v2516_v24 }
 0x57a   : > { %v2518_v26 = vmul.f32 %v2517_v25, %v2517_v25 }
 0x57c   : > { %v2519_v27 = vsel %vm617_vm1, %v2518_v26, 0.0 }
 0x57d   : > { %2520 = vadd.xlane.f32.xlu1 %v2519_v27 }
 0x60a   : > { %v2521_v54 = vpop.xlane.xlu1 %2520 }
 0x60b   : > { %v2522_v55 = vmul.f32 0.03125, %v2521_v54 }
 0x60d   : > { %v2523_v56 = vadd.f32 1e-05, %v2522_v55 }
 0x60f   : > { %3384 = vrsqrt.f32 %v2523_v56 }
 0x619   : > { %v3385_v57 = vpop.eup %3384 }
 0x61a   : > { %v2525_v59 = vmul.f32 %v3385_v57, %v2517_v25  ;;  %v2875_v25 = vld [vmem:[%s4139_s25] ss:$0 sm:$0xff] }
 0x61c   : > { %v2532_v61 = vmul.f32 %v2869_v58, %v2525_v59 }
 0x61e   : > { %v2539_v62 = vadd.f32 %v2870_v60, %v2532_v61 }
 0x620   : > { %3187 = vmatmul.mubr.msk.f32.vlgmr.msra.gmra.mrb[28].mxu0 %vm617_vm1, %v2539_v62 }
 0x6f3   : > { %v2620_v2 = vpop.f32.mrb[28].mxu0 }
 0x6f4   : > { %v2621_v4 = vadd.f32 %v2871_v1, %v2620_v2  ;;  %v3188_v5 = vpop.f32.mrb[29].mxu0 }
 0x6f6   : > { %v2624_v6 = vmax.f32 %v2621_v4, 0.0 }
 0x6f8   : > { %3222 = vmatmul.mubr.f32.vlgmr.msra.gmra.mrb[20].mxu1 %v2624_v6 }
 0x7cb   : > { %v2714_v8 = vpop.f32.mrb[20].mxu1 }
 0x7cc   : > { %v2715_v9 = vadd.f32 %v2873_v7, %v2714_v8  ;;  %v3223_v10 = vpop.f32.mrb[21].mxu1 }
 0x7ce   : > { %v2718_v12 = vadd.f32 %v2715_v9, %v2539_v62 }
 0x7d0   : > { %v2721_v13 = vsel %vm617_vm1, %v2718_v12, 0.0 }
 0x7d1   : > { %2722 = vadd.xlane.f32.xlu0 %v2721_v13 }
 0x85e   : > { %v2723_v14 = vpop.xlane.xlu0 %2722 }
 0x85f   : > { %v2724_v15 = vmul.f32 0.03125, %v2723_v14 }
 0x861   : > { %v2725_v16 = vsub.f32 %v2718_v12, %v2724_v15 }
 0x863   : > { %v2726_v11 = vmul.f32 %v2725_v16, %v2725_v16 }
 0x865   : > { %v2727_v17 = vsel %vm617_vm1, %v2726_v11, 0.0 }
 0x866   : > { %2728 = vadd.xlane.f32.xlu1 %v2727_v17 }
 0x8f3   : > { %v2729_v19 = vpop.xlane.xlu1 %2728 }
 0x8f4   : > { %v2730_v20 = vmul.f32 0.03125, %v2729_v19 }
 0x8f6   : > { %v2731_v21 = vadd.f32 1e-05, %v2730_v20 }
 0x8f8   : > { %3386 = vrsqrt.f32 %v2731_v21 }
 0x902   : > { %v3387_v22 = vpop.eup %3386 }
 0x903   : > { %v2733_v24 = vmul.f32 %v3387_v22, %v2725_v16 }
 0x905   : > { %v2740_v26 = vmul.f32 %v2874_v23, %v2733_v24 }
 0x907   : > { %v2747_v27 = vadd.f32 %v2875_v25, %v2740_v26 }
 0x909   : > { %2748 = vst.msk [vmem:[%s566_s20] sm:$0xff] %vm617_vm1, %v2747_v27 }
 0x90a   : > { %3401 = shalt.err (!%p3398_p3)
}
 0x90b   : > { %s3402_s24 = scalar_lea.hbm %s4049_s4, 128  ;;  %s3406_s19 = scalar_lea.hbm %s4141_s3, 256 }
 0x90c   : > { %p3403_p4 = scmp.ne.s32.totalorder %s4049_s4, %s3402_s24  ;;  %p3407_p9 = scmp.lt.u32.totalorder %s4049_s4, %s4141_s3 }
 0x90d   : > { %p3408_p10 = scmp.lt.u32.totalorder %s3406_s19, %s3402_s24  ;;  %p3410_p12 = scmp.lt.u32.totalorder %s3402_s24, %s4049_s4 }
 0x90e   : > { %p3404_p7 = pnand %p3403_p4, %p3589_p5 }
 0x90f   : > { %p3409_p11 = por %p3408_p10, %p3407_p9 }
 0x910   : > { %p3405_p8 = pneg %p3404_p7 }
 0x911   : > { %p3411_p13 = por %p3410_p12, %p3409_p11 }
 0x913   : > { %p3412_p0 = pnand %p3411_p13, %p3405_p8 }
 0x915   : > { %3415 = shalt.err (!%p3412_p0)
}
 0x916   : > { %3326 = dma.vmem_to_hbm [thread:$0]  (%p3589_p5), %s4051_s22, 128, %s4049_s4, %s2750_s23  }
 0x917 PF: > { %s4142_s1 = sld [smem:[#allocation7_spill]]  ;;  %s4143_s29 = sld [smem:[#allocation5_spill]] }
 0x91d   : > { %p3332_p1 = scmp.ge.s32.totalorder %s4142_s1, 2  ;;  %s2775_s0 = sand.u32 1, %s4143_s29  }
 0x91e   : > { %s2776_s27 = scalar_lea.sflag [#allocation3], %s2775_s0 }
 0x91f   : > { %p3329_p2 = pnand %p3332_p1, %p3593_p6 }
 0x921   : > { %3433 = dma.done.wait (!%p3329_p2), %s2776_s27, 128  }
 0x922   : > { %3435 = vsyncadd (!%p3329_p2), %s2776_s27, 4294967168  ;;  %s4145_s30 = sld [smem:[#allocation8_spill]]  ;;  %s4146_s18 = sld [smem:[#allocation6_spill]] }
 0x923   : > { %s4147_s29 = sld [smem:[#allocation9_spill]]  ;;  %s4148_s27 = smov %s3442_s28 }
 0x928   : > { %p28_p3 = scmp.ge.s32.totalorder %s4145_s30, 4   ;;  %s4149_s28 = smov %s4146_s18 }
 0x92a   :  { %30 = sbr.rel (!%p28_p3) target bundleno = 11 (0xb), region = 127 }
 0x931   :  { %2781 = vsyncpa [#allocation3], 1 }
 0x932   :  { %2783 = vsyncpa [#allocation3 + $0x1], 1 }

</bundles_post_ra>
